<compile_context>
chip_gen: v7x
topology: tpu7x:2x2x1
jax: 0.10.0
libtpu: 0.0.40
codegen_flags: <defaults>
</compile_context>

<pallas_src>
import math

import jax
import jax.numpy as jnp
from jax import lax
from jax.experimental import pallas as pl
from jax.experimental.pallas import tpu as pltpu

_INV_SQRT2 = 0.7071067811865476  # 1/sqrt(2), hoisted constant


def _round_up(x, m):
    return ((x + m - 1) // m) * m


def _sublane_multiple(dtype):
    # Native sublane packing: 8 rows of 32-bit, 16 of 16-bit, 32 of 8-bit.
    return max(8, 32 // jnp.dtype(dtype).itemsize)


def _tpu_vmem_capacity_bytes():
    try:
        cap = getattr(pltpu.get_tpu_info(), "vmem_capacity_bytes", None)
        if cap:
            return int(cap)
    except Exception:
        pass
    return 128 << 20  # conservative default (v5e/v6e)


def _pick_h_chunk(H, target=512):
    """Largest multiple of 128 that divides H and is <= target (else H)."""
    if H <= target or H % 128 != 0:
        return H
    c = (target // 128) * 128
    while c >= 128:
        if H % c == 0:
            return c
        c -= 128
    return H


def _gelu_exact(x):
    # nn.GELU() default == exact erf-based GELU.  (A tanh approximation would
    # route the transcendental to the EUP slot, but changes numerics vs the
    # PyTorch spec, so we keep erf.)
    return 0.5 * x * (1.0 + lax.erf(x * jnp.asarray(_INV_SQRT2, x.dtype)))


def _make_mlp_kernel(h_chunk, n_chunks):
    def mlp_kernel(x_ref, w1_ref, b1_ref, w2_ref, b2_ref, o_ref):
        x = x_ref[...]
        tm = x_ref.shape[0]
        dout = o_ref.shape[1]
        acc = jnp.zeros((tm, dout), jnp.float32)
        # Static (unrolled) loop over H chunks: fc1 -> GELU -> fc2 per chunk,
        # f32 accumulation.  Slices are static & 128-aligned (tile-aligned).
        for c in range(n_chunks):
            lo = c * h_chunk
            hi = lo + h_chunk
            p = jnp.dot(x, w1_ref[:, lo:hi], preferred_element_type=jnp.float32)
            p = _gelu_exact(p + b1_ref[:, lo:hi].astype(jnp.float32))
            acc = acc + jnp.dot(p.astype(w2_ref.dtype), w2_ref[lo:hi, :],
                                preferred_element_type=jnp.float32)
        # dropout(p=0.0) == identity -> no-op
        acc = acc + b2_ref[...].astype(jnp.float32)
        o_ref[...] = acc.astype(o_ref.dtype)

    return mlp_kernel


def _mlp_call(x2d, w1, b1_2d, w2, b2_2d, *, tm_eff, m_pad, h_chunk, n_chunks,
              vmem_bytes, cost, single_buffer_weights):
    Din, H = w1.shape
    Dout = w2.shape[1]
    # Constant-index-map operands never change across grid steps ->
    # single-buffer them to halve their VMEM footprint.
    wmode = {"pipeline_mode": pl.Buffered(1)} if single_buffer_weights else {}
    grid = (m_pad // tm_eff,)
    return pl.pallas_call(
        _make_mlp_kernel(h_chunk, n_chunks),
        out_shape=jax.ShapeDtypeStruct((m_pad, Dout), x2d.dtype),
        grid_spec=pltpu.PrefetchScalarGridSpec(
            num_scalar_prefetch=0,
            grid=grid,
            in_specs=[
                pl.BlockSpec((tm_eff, Din), lambda i: (i, 0)),       # x tile
                pl.BlockSpec((Din, H), lambda i: (0, 0), **wmode),   # w1 resident
                pl.BlockSpec((1, H), lambda i: (0, 0), **wmode),     # b1 resident
                pl.BlockSpec((H, Dout), lambda i: (0, 0), **wmode),  # w2 resident
                pl.BlockSpec((1, Dout), lambda i: (0, 0), **wmode),  # b2 resident
            ],
            out_specs=pl.BlockSpec((tm_eff, Dout), lambda i: (i, 0)),
        ),
        compiler_params=pltpu.CompilerParams(
            dimension_semantics=("parallel",),
            vmem_limit_bytes=vmem_bytes,
        ),
        cost_estimate=cost,
    )(x2d, w1, b1_2d, w2, b2_2d)


def mlp_pallas(x, w1, b1, w2, b2, *, tm=None):
    """x: (B, N, Din). w1: (Din, H), b1: (H,), w2: (H, Dout), b2: (Dout,)."""
    B, N, Din = x.shape
    H = w1.shape[1]
    Dout = w2.shape[1]
    M = B * N

    x2d = x.reshape(M, Din)
    b1_2d = b1.reshape(1, H)
    b2_2d = b2.reshape(1, Dout)

    vmem_cap = _tpu_vmem_capacity_bytes()
    if tm is None:
        # 512-token tiles on 128 MiB-VMEM chips (v5e/v6e), 256 on v7x (64 MiB).
        tm = 256 if vmem_cap <= (64 << 20) else 512

    sub = _sublane_multiple(x.dtype)
    m_rounded = _round_up(M, sub)
    # Cap the tile so the M grid has >=2 "parallel" steps when possible, so
    # multi-TensorCore chips (v7x / megacore) can shard the token axis.
    half = max(sub, _round_up((m_rounded + 1) // 2, sub))
    tm_eff = max(min(tm, half), sub)
    m_pad = _round_up(M, tm_eff)
    if m_pad != M:
        x2d = jnp.pad(x2d, ((0, m_pad - M), (0, 0)))

    h_chunk = _pick_h_chunk(H)
    n_chunks = H // h_chunk

    # VMEM budget: single-buffered weights/biases + double-buffered x/out
    # tiles + live f32 chunk intermediates, with headroom; capped at 85% of
    # this chip's physical VMEM.
    # NOTE: for very large f32 weights (e.g. ViT-H) pass bf16 w1/w2 from the
    # caller -- accumulation stays f32 inside the kernel.
    x_bytes = x2d.dtype.itemsize
    w_bytes = ((Din * H + H * Dout) * w1.dtype.itemsize
               + (H + Dout) * b1.dtype.itemsize)
    io_bytes = 2 * tm_eff * (Din + Dout) * x_bytes     # double-buffered tiles
    inter_bytes = 2 * tm_eff * h_chunk * 4             # live f32 chunk values
    vmem_bytes = int(1.4 * (w_bytes + io_bytes + inter_bytes)) + (4 << 20)
    vmem_bytes = max(vmem_bytes, 32 << 20)
    vmem_bytes = min(vmem_bytes, int(0.85 * vmem_cap))

    cost = pl.CostEstimate(
        flops=2 * m_pad * (Din * H + H * Dout),
        transcendentals=m_pad * H,
        # input read + output write + weights (read once, resident)
        bytes_accessed=(m_pad * (Din + Dout)) * x_bytes + w_bytes,
    )

    kwargs = dict(tm_eff=tm_eff, m_pad=m_pad, h_chunk=h_chunk,
                  n_chunks=n_chunks, vmem_bytes=vmem_bytes, cost=cost)
    try:
        out2d = _mlp_call(x2d, w1, b1_2d, w2, b2_2d,
                          single_buffer_weights=True, **kwargs)
    except Exception:
        # Fallback for Mosaic/Pallas versions without pipeline_mode support:
        # identical math, default (double-buffered) weight pipelining.
        out2d = _mlp_call(x2d, w1, b1_2d, w2, b2_2d,
                          single_buffer_weights=False, **kwargs)

    if m_pad != M:
        out2d = out2d[:M]
    return out2d.reshape(B, N, Dout)


def reference_mlp(x, w1, b1, w2, b2):
    h = jnp.einsum("bnd,dh->bnh", x, w1) + b1
    h = jax.nn.gelu(h, approximate=False)
    y = jnp.einsum("bnh,ho->bno", h, w2) + b2
    return y


if __name__ == "__main__":
    # Small ViT-ish shapes: batch=2, seq=8, in_features=32, hidden=4*32=128
    B, N, Din = 2, 8, 32
    H = 4 * Din        # hidden_features
    Dout = Din         # out_features defaults to in_features

    key = jax.random.PRNGKey(0)
    kx, kw1, kb1, kw2, kb2 = jax.random.split(key, 5)

    x = jax.random.normal(kx, (B, N, Din), dtype=jnp.float32)

    # Deterministic param init (roughly matching nn.Linear's uniform init).
    lim1 = 1.0 / math.sqrt(Din)
    lim2 = 1.0 / math.sqrt(H)
    # Stored as (in, out) so the kernel does x @ W directly
    # (PyTorch stores (out, in) and does x @ W.T -- same math).
    w1 = jax.random.uniform(kw1, (Din, H), jnp.float32, -lim1, lim1)
    b1 = jax.random.uniform(kb1, (H,), jnp.float32, -lim1, lim1)
    w2 = jax.random.uniform(kw2, (H, Dout), jnp.float32, -lim2, lim2)
    b2 = jax.random.uniform(kb2, (Dout,), jnp.float32, -lim2, lim2)

    ref = reference_mlp(x, w1, b1, w2, b2)

    # 1) Default path (auto tile; >=2 parallel grid steps at these shapes).
    out = mlp_pallas(x, w1, b1, w2, b2)
    jax.block_until_ready(out)
    assert out.shape == (B, N, Dout)
    assert jnp.allclose(out, ref, atol=1e-5, rtol=1e-5), (
        float(jnp.max(jnp.abs(out - ref))))

    # 2) Forced small tile -> multi-step pipelined grid over resident weights.
    out_tiled = mlp_pallas(x, w1, b1, w2, b2, tm=8)
    jax.block_until_ready(out_tiled)
    assert jnp.allclose(out_tiled, ref, atol=1e-5, rtol=1e-5), (
        float(jnp.max(jnp.abs(out_tiled - ref))))

    # 3) Ragged token count (M not a multiple of the tile) -> pad/slice path.
    x_odd = x[:, :7, :]
    out_odd = mlp_pallas(x_odd, w1, b1, w2, b2, tm=8)
    jax.block_until_ready(out_odd)
    ref_odd = reference_mlp(x_odd, w1, b1, w2, b2)
    assert jnp.allclose(out_odd, ref_odd, atol=1e-5, rtol=1e-5), (
        float(jnp.max(jnp.abs(out_odd - ref_odd))))

    # 4) bf16 production path (v6e/v7x MXU peak, 16-row sublane packing):
    #    f32 accumulation inside the kernel, looser tolerance vs f32 ref.
    xb, w1b, b1b, w2b, b2b = (a.astype(jnp.bfloat16)
                              for a in (x, w1, b1, w2, b2))
    out_bf16 = mlp_pallas(xb, w1b, b1b, w2b, b2b)
    jax.block_until_ready(out_bf16)
    assert out_bf16.dtype == jnp.bfloat16
    ref_bf16 = reference_mlp(*(a.astype(jnp.float32)
                               for a in (xb, w1b, b1b, w2b, b2b)))
    assert jnp.allclose(out_bf16.astype(jnp.float32), ref_bf16,
                        atol=5e-2, rtol=5e-2), (
        float(jnp.max(jnp.abs(out_bf16.astype(jnp.float32) - ref_bf16))))

    print("KERNEL_OK")
</pallas_src>

<mosaic_0001>
module attributes {stable_mosaic.version = 11 : i64} {
  func.func @mlp_kernel(%arg0: i32, %arg1: memref<8x32xf32, #tpu.memory_space<vmem>>, %arg2: memref<32x128xf32, #tpu.memory_space<vmem>>, %arg3: memref<1x128xf32, #tpu.memory_space<vmem>>, %arg4: memref<128x32xf32, #tpu.memory_space<vmem>>, %arg5: memref<1x32xf32, #tpu.memory_space<vmem>>, %arg6: memref<8x32xf32, #tpu.memory_space<vmem>>) attributes {dimension_semantics = [#tpu.dimension_semantics<parallel>], iteration_bounds = array<i64: 2>, scalar_prefetch = 0 : i64, scratch_operands = 0 : i64, tpu.core_type = #tpu.core_type<tc>, window_params = [{transform_indices = @transform_0, window_bounds = array<i64: 8, 32>}, {pipeline_mode = #tpu.pipeline_mode<synchronous>, transform_indices = @transform_1, window_bounds = array<i64: 32, 128>}, {pipeline_mode = #tpu.pipeline_mode<synchronous>, transform_indices = @transform_2, window_bounds = array<i64: 1, 128>}, {pipeline_mode = #tpu.pipeline_mode<synchronous>, transform_indices = @transform_3, window_bounds = array<i64: 128, 32>}, {pipeline_mode = #tpu.pipeline_mode<synchronous>, transform_indices = @transform_4, window_bounds = array<i64: 1, 32>}, {transform_indices = @transform_5, window_bounds = array<i64: 8, 32>}]} {
    %c0 = arith.constant 0 : index
    %c0_0 = arith.constant 0 : index
    %0 = vector.load %arg1[%c0, %c0_0] : memref<8x32xf32, #tpu.memory_space<vmem>>, vector<8x32xf32>
    %cst = arith.constant 0.000000e+00 : f32
    %1 = vector.broadcast %cst : f32 to vector<8x32xf32>
    %c0_1 = arith.constant 0 : index
    %c0_2 = arith.constant 0 : index
    %2 = vector.load %arg2[%c0_1, %c0_2] : memref<32x128xf32, #tpu.memory_space<vmem>>, vector<32x128xf32>
    %cst_3 = arith.constant dense<0.000000e+00> : vector<8x128xf32>
    %3 = tpu.matmul %0, %2, %cst_3 {dimension_numbers = #tpu.dot_dimension_numbers<[1], [0], [0], [1], [0, 0, 1, 1], [], []>} : vector<8x32xf32>, vector<32x128xf32>, vector<8x128xf32> -> vector<8x128xf32>
    %c0_4 = arith.constant 0 : index
    %c0_5 = arith.constant 0 : index
    %4 = vector.load %arg3[%c0_4, %c0_5] : memref<1x128xf32, #tpu.memory_space<vmem>>, vector<1x128xf32>
    %5 = vector.broadcast %4 : vector<1x128xf32> to vector<8x128xf32>
    %6 = arith.addf %3, %5 : vector<8x128xf32>
    %cst_6 = arith.constant 5.000000e-01 : f32
    %7 = vector.broadcast %cst_6 : f32 to vector<8x128xf32>
    %8 = arith.mulf %7, %6 : vector<8x128xf32>
    %cst_7 = arith.constant 0.707106769 : f32
    %9 = vector.broadcast %cst_7 : f32 to vector<8x128xf32>
    %10 = arith.mulf %6, %9 : vector<8x128xf32>
    %11 = math.erf %10 : vector<8x128xf32>
    %cst_8 = arith.constant 1.000000e+00 : f32
    %12 = vector.broadcast %cst_8 : f32 to vector<8x128xf32>
    %13 = arith.addf %12, %11 : vector<8x128xf32>
    %14 = arith.mulf %8, %13 : vector<8x128xf32>
    %c0_9 = arith.constant 0 : index
    %c0_10 = arith.constant 0 : index
    %15 = vector.load %arg4[%c0_9, %c0_10] : memref<128x32xf32, #tpu.memory_space<vmem>>, vector<128x32xf32>
    %cst_11 = arith.constant dense<0.000000e+00> : vector<8x32xf32>
    %16 = tpu.matmul %14, %15, %cst_11 {dimension_numbers = #tpu.dot_dimension_numbers<[1], [0], [0], [1], [0, 0, 1, 1], [], []>} : vector<8x128xf32>, vector<128x32xf32>, vector<8x32xf32> -> vector<8x32xf32>
    %17 = arith.addf %1, %16 : vector<8x32xf32>
    %c0_12 = arith.constant 0 : index
    %c0_13 = arith.constant 0 : index
    %18 = vector.load %arg5[%c0_12, %c0_13] : memref<1x32xf32, #tpu.memory_space<vmem>>, vector<1x32xf32>
    %19 = vector.broadcast %18 : vector<1x32xf32> to vector<8x32xf32>
    %20 = arith.addf %17, %19 : vector<8x32xf32>
    %c0_14 = arith.constant 0 : index
    %c0_15 = arith.constant 0 : index
    %21 = vector.load %arg6[%c0_14, %c0_15] : memref<8x32xf32, #tpu.memory_space<vmem>>, vector<8x32xf32>
    tpu.vector_store %arg6[%c0_14, %c0_15], %20 {strides = array<i32>} : memref<8x32xf32, #tpu.memory_space<vmem>>, vector<8x32xf32>,
    return
  }
  func.func @transform_0(%arg0: i32) -> (i32, i32) {
    %c0_i32 = arith.constant 0 : i32
    %c0_i32_0 = arith.constant 0 : i32
    return %arg0, %c0_i32 : i32, i32
  }
  func.func @transform_1(%arg0: i32) -> (i32, i32) {
    %c0_i32 = arith.constant 0 : i32
    %c0_i32_0 = arith.constant 0 : i32
    %c0_i32_1 = arith.constant 0 : i32
    return %c0_i32, %c0_i32_0 : i32, i32
  }
  func.func @transform_2(%arg0: i32) -> (i32, i32) {
    %c0_i32 = arith.constant 0 : i32
    %c0_i32_0 = arith.constant 0 : i32
    %c0_i32_1 = arith.constant 0 : i32
    return %c0_i32, %c0_i32_0 : i32, i32
  }
  func.func @transform_3(%arg0: i32) -> (i32, i32) {
    %c0_i32 = arith.constant 0 : i32
    %c0_i32_0 = arith.constant 0 : i32
    %c0_i32_1 = arith.constant 0 : i32
    return %c0_i32, %c0_i32_0 : i32, i32
  }
  func.func @transform_4(%arg0: i32) -> (i32, i32) {
    %c0_i32 = arith.constant 0 : i32
    %c0_i32_0 = arith.constant 0 : i32
    %c0_i32_1 = arith.constant 0 : i32
    return %c0_i32, %c0_i32_0 : i32, i32
  }
  func.func @transform_5(%arg0: i32) -> (i32, i32) {
    %c0_i32 = arith.constant 0 : i32
    %c0_i32_0 = arith.constant 0 : i32
    return %arg0, %c0_i32 : i32, i32
  }
}

module attributes {stable_mosaic.version = 11 : i64} {
  func.func @mlp_kernel(%arg0: i32, %arg1: memref<8x32xf32, #tpu.memory_space<vmem>>, %arg2: memref<32x128xf32, #tpu.memory_space<vmem>>, %arg3: memref<1x128xf32, #tpu.memory_space<vmem>>, %arg4: memref<128x32xf32, #tpu.memory_space<vmem>>, %arg5: memref<1x32xf32, #tpu.memory_space<vmem>>, %arg6: memref<8x32xf32, #tpu.memory_space<vmem>>) attributes {dimension_semantics = [#tpu.dimension_semantics<parallel>], iteration_bounds = array<i64: 2>, scalar_prefetch = 0 : i64, scratch_operands = 0 : i64, tpu.core_type = #tpu.core_type<tc>, window_params = [{transform_indices = @transform_0, window_bounds = array<i64: 8, 32>}, {pipeline_mode = #tpu.pipeline_mode<synchronous>, transform_indices = @transform_1, window_bounds = array<i64: 32, 128>}, {pipeline_mode = #tpu.pipeline_mode<synchronous>, transform_indices = @transform_2, window_bounds = array<i64: 1, 128>}, {pipeline_mode = #tpu.pipeline_mode<synchronous>, transform_indices = @transform_3, window_bounds = array<i64: 128, 32>}, {pipeline_mode = #tpu.pipeline_mode<synchronous>, transform_indices = @transform_4, window_bounds = array<i64: 1, 32>}, {transform_indices = @transform_5, window_bounds = array<i64: 8, 32>}]} {
    %c0 = arith.constant 0 : index
    %c0_0 = arith.constant 0 : index
    %0 = vector.load %arg1[%c0, %c0_0] : memref<8x32xf32, #tpu.memory_space<vmem>>, vector<8x32xf32>
    %cst = arith.constant 0.000000e+00 : f32
    %1 = vector.broadcast %cst : f32 to vector<8x32xf32>
    %c0_1 = arith.constant 0 : index
    %c0_2 = arith.constant 0 : index
    %2 = vector.load %arg2[%c0_1, %c0_2] : memref<32x128xf32, #tpu.memory_space<vmem>>, vector<32x128xf32>
    %cst_3 = arith.constant dense<0.000000e+00> : vector<8x128xf32>
    %3 = tpu.matmul %0, %2, %cst_3 {dimension_numbers = #tpu.dot_dimension_numbers<[1], [0], [0], [1], [0, 0, 1, 1], [], []>} : vector<8x32xf32>, vector<32x128xf32>, vector<8x128xf32> -> vector<8x128xf32>
    %c0_4 = arith.constant 0 : index
    %c0_5 = arith.constant 0 : index
    %4 = vector.load %arg3[%c0_4, %c0_5] : memref<1x128xf32, #tpu.memory_space<vmem>>, vector<1x128xf32>
    %5 = vector.broadcast %4 : vector<1x128xf32> to vector<8x128xf32>
    %6 = arith.addf %3, %5 : vector<8x128xf32>
    %cst_6 = arith.constant 5.000000e-01 : f32
    %7 = vector.broadcast %cst_6 : f32 to vector<8x128xf32>
    %8 = arith.mulf %7, %6 : vector<8x128xf32>
    %cst_7 = arith.constant 0.707106769 : f32
    %9 = vector.broadcast %cst_7 : f32 to vector<8x128xf32>
    %10 = arith.mulf %6, %9 : vector<8x128xf32>
    %11 = math.erf %10 : vector<8x128xf32>
    %cst_8 = arith.constant 1.000000e+00 : f32
    %12 = vector.broadcast %cst_8 : f32 to vector<8x128xf32>
    %13 = arith.addf %12, %11 : vector<8x128xf32>
    %14 = arith.mulf %8, %13 : vector<8x128xf32>
    %c0_9 = arith.constant 0 : index
    %c0_10 = arith.constant 0 : index
    %15 = vector.load %arg4[%c0_9, %c0_10] : memref<128x32xf32, #tpu.memory_space<vmem>>, vector<128x32xf32>
    %cst_11 = arith.constant dense<0.000000e+00> : vector<8x32xf32>
    %16 = tpu.matmul %14, %15, %cst_11 {dimension_numbers = #tpu.dot_dimension_numbers<[1], [0], [0], [1], [0, 0, 1, 1], [], []>} : vector<8x128xf32>, vector<128x32xf32>, vector<8x32xf32> -> vector<8x32xf32>
    %17 = arith.addf %1, %16 : vector<8x32xf32>
    %c0_12 = arith.constant 0 : index
    %c0_13 = arith.constant 0 : index
    %18 = vector.load %arg5[%c0_12, %c0_13] : memref<1x32xf32, #tpu.memory_space<vmem>>, vector<1x32xf32>
    %19 = vector.broadcast %18 : vector<1x32xf32> to vector<8x32xf32>
    %20 = arith.addf %17, %19 : vector<8x32xf32>
    %c0_14 = arith.constant 0 : index
    %c0_15 = arith.constant 0 : index
    %21 = vector.load %arg6[%c0_14, %c0_15] : memref<8x32xf32, #tpu.memory_space<vmem>>, vector<8x32xf32>
    tpu.vector_store %arg6[%c0_14, %c0_15], %20 {strides = array<i32>} : memref<8x32xf32, #tpu.memory_space<vmem>>, vector<8x32xf32>,
    return
  }
  func.func @transform_0(%arg0: i32) -> (i32, i32) {
    %c0_i32 = arith.constant 0 : i32
    %c0_i32_0 = arith.constant 0 : i32
    return %arg0, %c0_i32 : i32, i32
  }
  func.func @transform_1(%arg0: i32) -> (i32, i32) {
    %c0_i32 = arith.constant 0 : i32
    %c0_i32_0 = arith.constant 0 : i32
    %c0_i32_1 = arith.constant 0 : i32
    return %c0_i32, %c0_i32_0 : i32, i32
  }
  func.func @transform_2(%arg0: i32) -> (i32, i32) {
    %c0_i32 = arith.constant 0 : i32
    %c0_i32_0 = arith.constant 0 : i32
    %c0_i32_1 = arith.constant 0 : i32
    return %c0_i32, %c0_i32_0 : i32, i32
  }
  func.func @transform_3(%arg0: i32) -> (i32, i32) {
    %c0_i32 = arith.constant 0 : i32
    %c0_i32_0 = arith.constant 0 : i32
    %c0_i32_1 = arith.constant 0 : i32
    return %c0_i32, %c0_i32_0 : i32, i32
  }
  func.func @transform_4(%arg0: i32) -> (i32, i32) {
    %c0_i32 = arith.constant 0 : i32
    %c0_i32_0 = arith.constant 0 : i32
    %c0_i32_1 = arith.constant 0 : i32
    return %c0_i32, %c0_i32_0 : i32, i32
  }
  func.func @transform_5(%arg0: i32) -> (i32, i32) {
    %c0_i32 = arith.constant 0 : i32
    %c0_i32_0 = arith.constant 0 : i32
    return %arg0, %c0_i32 : i32, i32
  }
}

</mosaic_0001>

<bundles_post_ra>
// kernel: tpu_custom_call.1
= control target key start
LH: loop header
LB: loop body
LE: loop exit
PB: predicated region body
PF: predicated region fallthrough
CT: control target
= control target key end

     0   :  { %10 = vsyncpa [#allocation3], 0  ;;  %s899_s0 = inlined_call_operand.vmem [shape: f32[16,32], index: 0, kind: input, shape index: {}]   ;;  %s900_s1 = inlined_call_operand.vmem [shape: f32[32,128], index: 1, kind: input, shape index: {}]   ;;  %s901_s2 = inlined_call_operand.vmem [shape: f32[1,128], index: 2, kind: input, shape index: {}]   ;;  %s902_s3 = inlined_call_operand.vmem [shape: f32[128,32], index: 3, kind: input, shape index: {}]   ;;  %s903_s4 = inlined_call_operand.vmem [shape: f32[1,32], index: 4, kind: input, shape index: {}]   ;;  %s904_s5 = inlined_call_operand.hbm [shape: f32[16,32], index: 5, kind: output, shape index: {}]  }
   0x1   :  { %12 = vsyncpa [#allocation3 + $0x1], 0  ;;  %s731_s18 = smov 0   ;;  %s733_s19 = smov 0  }
   0x2   :  { %s735_s20 = smov 0   ;;  %s737_s21 = smov 0  }
   0x3 LB: > { %s752_s22 = sadd.s32 4294967295, %s695_s21   ;;  %s478_s23 = sadd.s32 4294967294, %s695_s21   ;;  %s695_s21 = sphi %s737_s21, %s910_s21   ;;  %s691_s20 = sphi %s735_s20, %s909_s20   ;;  %s687_s19 = sphi %s733_s19, %s908_s19   ;;  %s683_s18 = sphi %s731_s18, %s907_s18  }
   0x4   : > { %s756_s24 = sadd.s32 1, %s695_s21   ;;  %s135_s25 = sadd.s32 1, %s691_s20 }
   0x5   : > { %s132_s26 = ssub.s32 %s695_s21, %s756_s24  ;;  %p145_p0 = scmp.ne.s32.totalorder %s691_s20, %s687_s19 }
   0x6   : > { %p133_p1 = scmp.eq.s32.totalorder %s132_s26, 0  ;;  %p146_p2 = scmp.eq.s32.totalorder %s752_s22, 1 }
   0x7   : > { %p151_p3 = scmp.ne.s32.totalorder %s687_s19, %s683_s18  ;;  %p152_p4 = scmp.eq.s32.totalorder %s478_s23, 1 }
   0x8   : > { %s767_s27 = scalar_select %p133_p1, %s691_s20, %s135_s25  }
   0x9   : > { %p769_p5 = por %p146_p2, %p145_p0  ;;  %p773_p6 = por %p152_p4, %p151_p3 }
   0xa   : > { %p481_p7 = scmp.ge.s32.totalorder %s695_s21, 1  ;;  %p189_p8 = scmp.lt.s32.totalorder %s695_s21, 3 }
   0xc   : > { %p190_p9 = pnand %p481_p7, %p189_p8 }
   0xd   : > { %v221_v0 = vld [vmem:[%s900_s1] sm:$0xff] (!%p190_p9)  ;;  %v222_v1 = vld [vmem:[%s900_s1 + $0x8] sm:$0xff] (!%p190_p9)  ;;  %v223_v2 = vld [vmem:[%s900_s1 + $0x10] sm:$0xff] (!%p190_p9)  ;;  %v697_v3 = vmov (!%p190_p9), 0.0|0.0   ;;  %vm698_vm0 = vmmov (!%p190_p9), 0   ;;  %v699_v6 = vmov (!%p190_p9), 0.0  }
   0xe   : > { %193 = sbr.rel (%p190_p9) target bundleno = 485 (0x1e5), region = 40  ;;  %559 = vmatprep.subr.bf16.mxu0 (!%p190_p9), %v697_v3  ;;  %v560_v4 = vpack.c.bf16 (!%p190_p9), %v222_v1, %v221_v0  ;;  %v224_v5 = vld [vmem:[%s900_s1 + $0x18] sm:$0xff] (!%p190_p9)  ;;  %521 = vmatprep.mubr.msk.f32.mxu0 (!%p190_p9), %vm698_vm0, %v699_v6  ;;  %p216_p10 = scmp.lt.s32.totalorder (!%p190_p9), %s752_s22, 1  ;;  %v311_v7 = vld [vmem:[%s902_s3] sm:$0xff] (!%p190_p9)  ;;  %v312_v8 = vld [vmem:[%s902_s3 + $0x8] sm:$0xff] (!%p190_p9)  ;;  %vm232_vm1 = vcmask (!%p190_p9), 261120  }
   0xf   : > { %565 = vmatprep.subr.bf16.mxu1 (!%p190_p9), %v697_v3  ;;  %v566_v9 = vpack.c.bf16 (!%p190_p9), %v312_v8, %v311_v7  ;;  %v313_v10 = vld [vmem:[%s902_s3 + $0x10] sm:$0xff] (!%p190_p9)  ;;  %v314_v11 = vld [vmem:[%s902_s3 + $0x18] sm:$0xff] (!%p190_p9)  ;;  %556 = vmatprep.mubr.msk.f32.mxu1 (!%p190_p9), %vm698_vm0, %v699_v6  ;;  %v563_v12 = vpack.c.bf16 (!%p190_p9), %v224_v5, %v223_v2  ;;  %v315_v14 = vld [vmem:[%s902_s3 + $0x20] sm:$0xff] (!%p190_p9)  ;;  %s213_s26 = sand.u32 (!%p190_p9), 1, %s687_s19   ;;  %s488_s8 = sshll.u32 (!%p190_p9), %s752_s22, 7 }
  0x10   : > { %561 = vmatpush3.bf16.msra.mxu0 (!%p190_p9), %v560_v4  ;;  %v569_v13 = vpack.c.bf16 (!%p190_p9), %v314_v11, %v313_v10  ;;  %v316_v15 = vld [vmem:[%s902_s3 + $0x28] sm:$0xff] (!%p190_p9)  ;;  %v317_v18 = vld [vmem:[%s902_s3 + $0x30] sm:$0xff] (!%p190_p9)  ;;  %v318_v19 = vld [vmem:[%s902_s3 + $0x38] sm:$0xff] (!%p190_p9)  ;;  %s406_s14 = scalar_lea.sflag (!%p190_p9), [#allocation3], %s213_s26 }
  0x11   : > { %562 = vmatprep.subr.bf16.mxu0 (!%p190_p9), %v697_v3  ;;  %567 = vmatpush3.bf16.msra.mxu1 (!%p190_p9), %v566_v9  ;;  %v572_v17 = vpack.c.bf16 (!%p190_p9), %v316_v15, %v315_v14  ;;  %v575_v20 = vpack.c.bf16 (!%p190_p9), %v318_v19, %v317_v18  ;;  %v319_v21 = vld [vmem:[%s902_s3 + $0x40] sm:$0xff] (!%p190_p9)  ;;  %v320_v22 = vld [vmem:[%s902_s3 + $0x48] sm:$0xff] (!%p190_p9)  ;;  %v321_v24 = vld [vmem:[%s902_s3 + $0x50] sm:$0xff] (!%p190_p9) }
  0x12   : > { %568 = vmatprep.subr.bf16.mxu1 (!%p190_p9), %v697_v3  ;;  %v578_v23 = vpack.c.bf16 (!%p190_p9), %v320_v22, %v319_v21  ;;  %v322_v25 = vld [vmem:[%s902_s3 + $0x58] sm:$0xff] (!%p190_p9)  ;;  %v323_v27 = vld [vmem:[%s902_s3 + $0x60] sm:$0xff] (!%p190_p9)  ;;  %v324_v28 = vld [vmem:[%s902_s3 + $0x68] sm:$0xff] (!%p190_p9) }
  0x13   : > { %v581_v26 = vpack.c.bf16 (!%p190_p9), %v322_v25, %v321_v24  ;;  %v584_v29 = vpack.c.bf16 (!%p190_p9), %v324_v28, %v323_v27  ;;  %v325_v30 = vld [vmem:[%s902_s3 + $0x70] sm:$0xff] (!%p190_p9)  ;;  %v326_v31 = vld [vmem:[%s902_s3 + $0x78] sm:$0xff] (!%p190_p9)  ;;  %v484_v33 = vld [vmem:[%s901_s2] ss:$0 sm:$0xff] (!%p190_p9) }
  0x14   : > { %564 = vmatpush3.bf16.msra.mxu0 (!%p190_p9), %v563_v12  ;;  %v587_v32 = vpack.c.bf16 (!%p190_p9), %v326_v31, %v325_v30  ;;  %v486_v42 = vld [vmem:[%s903_s4] ss:$0 sm:$0xff] (!%p190_p9) }
  0x15   : > { %s217_s30 = scalar_select %p216_p10, %s752_s22, 1  ;;  %570 = vmatpush3.bf16.msra.mxu1 %v569_v13 }
  0x16   : > { %571 = vmatprep.subr.bf16.mxu1 %v697_v3  ;;  %s700_s22 = smov [#allocation2]  }
  0x17   : > { %s483_s6 = sshll.u32 %s217_s30, 3  ;;  %s482_s30 = sshll.u32 %s213_s26, 3 }
  0x18   : > { %s219_s13 = scalar_lea.vmem %s899_s0, %s483_s6  ;;  %s215_s9 = scalar_lea.vmem [#allocation2], %s482_s30 }
  0x19   : > { %v220_v16 = vld [vmem:[%s219_s13] sm:$0xff]  ;;  %573 = vmatpush3.bf16.msra.mxu1 %v572_v17  ;;  %s419_s10 = sshll.u32 %s215_s9, 4  ;;  %s856_s13 = scalar_lea.hbm %s904_s5, %s488_s8  ;;  %s858_s10 = int_to_ptr.vmem [resolvable:$true] %s419_s10 }
  0x1a   : > { %522 = vmatmul.mubr.msk.f32.vlgmr.msra.gmra.mrb[0].mxu0 %vm232_vm1, %v220_v16  ;;  %574 = vmatprep.subr.bf16.mxu1 %v697_v3  ;;  %s633_s15 = scalar_lea.vmem %s858_s10, 128  ;;  %s637_s16 = sshll.u32 %s700_s22, 4  ;;  %s638_s16 = int_to_ptr.vmem [resolvable:$false] %s637_s16 }
  0x1b   : > { %p634_p11 = scmp.ne.s32.totalorder %s858_s10, %s633_s15  ;;  %s639_s17 = scalar_lea.vmem %s638_s16, 256 }
  0x1c   : > { %p640_p0 = scmp.lt.s32.totalorder %s858_s10, %s638_s16  ;;  %p641_p1 = scmp.lt.s32.totalorder %s639_s17, %s633_s15 }
  0x1d   : > { %576 = vmatpush3.bf16.msra.mxu1 %v575_v20  ;;  %p635_p12 = pnand %p634_p11, %p769_p5 }
  0x1e   : > { %577 = vmatprep.subr.bf16.mxu1 %v697_v3  ;;  %p642_p2 = por %p641_p1, %p640_p0 }
  0x1f   : > { %p636_p13 = pneg %p635_p12 }
  0x21   : > { %579 = vmatpush3.bf16.msra.mxu1 %v578_v23  ;;  %p643_p3 = pnand %p642_p2, %p636_p13 }
  0x22   : > { %580 = vmatprep.subr.bf16.mxu1 %v697_v3 }
  0x25   : > { %582 = vmatpush3.bf16.msra.mxu1 %v581_v26 }
  0x26   : > { %583 = vmatprep.subr.bf16.mxu1 %v697_v3 }
  0x29   : > { %585 = vmatpush3.bf16.msra.mxu1 %v584_v29 }
  0x2a   : > { %586 = vmatprep.subr.bf16.mxu1 %v697_v3 }
  0x2d   : > { %588 = vmatpush3.bf16.msra.mxu1 %v587_v32 }
  0xed   : > { %v302_v34 = vpop.f32.mrb[0].mxu0 }
  0xee   : > { %v303_v35 = vadd.f32 %v484_v33, %v302_v34  ;;  %v523_v36 = vpop.f32.mrb[1].mxu0 }
  0xf0   : > { %v307_v37 = vmul.f32 0.70710677, %v303_v35  ;;  %v306_v39 = vmul.f32 0.5, %v303_v35 }
  0xf2   : > { %631 = verf.f32 %v307_v37 }
  0xfc   : > { %v632_v38 = vpop.eup %631 }
  0xfd   : > { %v309_v40 = vadd.f32 1.0, %v632_v38 }
  0xff   : > { %v310_v41 = vmul.f32 %v309_v40, %v306_v39 }
 0x101   : > { %557 = vmatmul.mubr.f32.vlgmr.msra.gmra.mrb[0].mxu1 %v310_v41 }
 0x1d4   : > { %v400_v43 = vpop.f32.mrb[0].mxu1 }
 0x1d5   : > { %v401_v44 = vadd.f32 %v486_v42, %v400_v43  ;;  %v558_v45 = vpop.f32.mrb[1].mxu1 }
 0x1d7   : > { %404 = vst.msk [vmem:[%s215_s9] sm:$0xff] %vm232_vm1, %v401_v44 }
 0x1d8   : > { %646 = shalt.err (!%p643_p3)
}
 0x1d9   : > { %s647_s23 = scalar_lea.hbm %s856_s13, 128  ;;  %s651_s30 = scalar_lea.hbm %s904_s5, 256 }
 0x1da   : > { %p648_p4 = scmp.ne.s32.totalorder %s856_s13, %s647_s23  ;;  %p652_p9 = scmp.lt.u32.totalorder %s856_s13, %s904_s5 }
 0x1db   : > { %p653_p10 = scmp.lt.u32.totalorder %s651_s30, %s647_s23  ;;  %p655_p12 = scmp.lt.u32.totalorder %s647_s23, %s856_s13 }
 0x1dc   : > { %p649_p7 = pnand %p648_p4, %p769_p5 }
 0x1dd   : > { %p654_p11 = por %p653_p10, %p652_p9 }
 0x1de   : > { %p650_p8 = pneg %p649_p7 }
 0x1df   : > { %p656_p13 = por %p655_p12, %p654_p11 }
 0x1e1   : > { %p657_p0 = pnand %p656_p13, %p650_p8 }
 0x1e3   : > { %660 = shalt.err (!%p657_p0)
}
 0x1e4   : > { %589 = dma.vmem_to_hbm [thread:$0]  (%p769_p5), %s858_s10, 128, %s856_s13, %s406_s14  }
 0x1e5 PF: > { %p595_p1 = scmp.ge.s32.totalorder %s695_s21, 2  ;;  %s431_s8 = sand.u32 1, %s683_s18  }
 0x1e6   : > { %s432_s9 = scalar_lea.sflag [#allocation3], %s431_s8 }
 0x1e7   : > { %p592_p2 = pnand %p595_p1, %p773_p6 }
 0x1e9   : > { %678 = dma.done.wait (!%p592_p2), %s432_s9, 128  }
 0x1ea   : > { %680 = vsyncadd (!%p592_p2), %s432_s9, 4294967168  ;;  %p15_p3 = scmp.ge.s32.totalorder %s756_s24, 4   ;;  %s907_s18 = smov %s687_s19 }
 0x1eb   : > { %s908_s19 = smov %s691_s20  ;;  %s909_s20 = smov %s767_s27 }
 0x1ec   : > { %s910_s21 = smov %s756_s24  ;;  %17 = sbr.rel (!%p15_p3) target bundleno = 3 (0x3), region = 75 }
 0x1f3   :  { %437 = vsyncpa [#allocation3], 1 }
 0x1f4   :  { %439 = vsyncpa [#allocation3 + $0x1], 1 }

// kernel: tpu_custom_call.1
= control target key start
LH: loop header
LB: loop body
LE: loop exit
PB: predicated region body
PF: predicated region fallthrough
CT: control target
= control target key end

     0   :  { %10 = vsyncpa [#allocation3], 0  ;;  %s899_s0 = inlined_call_operand.vmem [shape: f32[16,32], index: 0, kind: input, shape index: {}]   ;;  %s900_s1 = inlined_call_operand.vmem [shape: f32[32,128], index: 1, kind: input, shape index: {}]   ;;  %s901_s2 = inlined_call_operand.vmem [shape: f32[1,128], index: 2, kind: input, shape index: {}]   ;;  %s902_s3 = inlined_call_operand.vmem [shape: f32[128,32], index: 3, kind: input, shape index: {}]   ;;  %s903_s4 = inlined_call_operand.vmem [shape: f32[1,32], index: 4, kind: input, shape index: {}]   ;;  %s904_s5 = inlined_call_operand.hbm [shape: f32[16,32], index: 5, kind: output, shape index: {}]  }
   0x1   :  { %12 = vsyncpa [#allocation3 + $0x1], 0  ;;  %s731_s18 = smov 0   ;;  %s733_s19 = smov 0  }
   0x2   :  { %s735_s20 = smov 0   ;;  %s737_s21 = smov 0  }
   0x3 LB: > { %s752_s22 = sadd.s32 4294967295, %s695_s21   ;;  %s478_s23 = sadd.s32 4294967294, %s695_s21   ;;  %s695_s21 = sphi %s737_s21, %s910_s21   ;;  %s691_s20 = sphi %s735_s20, %s909_s20   ;;  %s687_s19 = sphi %s733_s19, %s908_s19   ;;  %s683_s18 = sphi %s731_s18, %s907_s18  }
   0x4   : > { %s756_s24 = sadd.s32 1, %s695_s21   ;;  %s135_s25 = sadd.s32 1, %s691_s20 }
   0x5   : > { %s132_s26 = ssub.s32 %s695_s21, %s756_s24  ;;  %p145_p0 = scmp.ne.s32.totalorder %s691_s20, %s687_s19 }
   0x6   : > { %p133_p1 = scmp.eq.s32.totalorder %s132_s26, 0  ;;  %p146_p2 = scmp.eq.s32.totalorder %s752_s22, 1 }
   0x7   : > { %p151_p3 = scmp.ne.s32.totalorder %s687_s19, %s683_s18  ;;  %p152_p4 = scmp.eq.s32.totalorder %s478_s23, 1 }
   0x8   : > { %s767_s27 = scalar_select %p133_p1, %s691_s20, %s135_s25  }
   0x9   : > { %p769_p5 = por %p146_p2, %p145_p0  ;;  %p773_p6 = por %p152_p4, %p151_p3 }
   0xa   : > { %p481_p7 = scmp.ge.s32.totalorder %s695_s21, 1  ;;  %p189_p8 = scmp.lt.s32.totalorder %s695_s21, 3 }
   0xc   : > { %p190_p9 = pnand %p481_p7, %p189_p8 }
   0xd   : > { %v221_v0 = vld [vmem:[%s900_s1] sm:$0xff] (!%p190_p9)  ;;  %v222_v1 = vld [vmem:[%s900_s1 + $0x8] sm:$0xff] (!%p190_p9)  ;;  %v223_v2 = vld [vmem:[%s900_s1 + $0x10] sm:$0xff] (!%p190_p9)  ;;  %v697_v3 = vmov (!%p190_p9), 0.0|0.0   ;;  %vm698_vm0 = vmmov (!%p190_p9), 0   ;;  %v699_v6 = vmov (!%p190_p9), 0.0  }
   0xe   : > { %193 = sbr.rel (%p190_p9) target bundleno = 485 (0x1e5), region = 40  ;;  %559 = vmatprep.subr.bf16.mxu0 (!%p190_p9), %v697_v3  ;;  %v560_v4 = vpack.c.bf16 (!%p190_p9), %v222_v1, %v221_v0  ;;  %v224_v5 = vld [vmem:[%s900_s1 + $0x18] sm:$0xff] (!%p190_p9)  ;;  %521 = vmatprep.mubr.msk.f32.mxu0 (!%p190_p9), %vm698_vm0, %v699_v6  ;;  %p216_p10 = scmp.lt.s32.totalorder (!%p190_p9), %s752_s22, 1  ;;  %v311_v7 = vld [vmem:[%s902_s3] sm:$0xff] (!%p190_p9)  ;;  %v312_v8 = vld [vmem:[%s902_s3 + $0x8] sm:$0xff] (!%p190_p9)  ;;  %vm232_vm1 = vcmask (!%p190_p9), 261120  }
   0xf   : > { %565 = vmatprep.subr.bf16.mxu1 (!%p190_p9), %v697_v3  ;;  %v566_v9 = vpack.c.bf16 (!%p190_p9), %v312_v8, %v311_v7  ;;  %v313_v10 = vld [vmem:[%s902_s3 + $0x10] sm:$0xff] (!%p190_p9)  ;;  %v314_v11 = vld [vmem:[%s902_s3 + $0x18] sm:$0xff] (!%p190_p9)  ;;  %556 = vmatprep.mubr.msk.f32.mxu1 (!%p190_p9), %vm698_vm0, %v699_v6  ;;  %v563_v12 = vpack.c.bf16 (!%p190_p9), %v224_v5, %v223_v2  ;;  %v315_v14 = vld [vmem:[%s902_s3 + $0x20] sm:$0xff] (!%p190_p9)  ;;  %s213_s26 = sand.u32 (!%p190_p9), 1, %s687_s19   ;;  %s488_s8 = sshll.u32 (!%p190_p9), %s752_s22, 7 }
  0x10   : > { %561 = vmatpush3.bf16.msra.mxu0 (!%p190_p9), %v560_v4  ;;  %v569_v13 = vpack.c.bf16 (!%p190_p9), %v314_v11, %v313_v10  ;;  %v316_v15 = vld [vmem:[%s902_s3 + $0x28] sm:$0xff] (!%p190_p9)  ;;  %v317_v18 = vld [vmem:[%s902_s3 + $0x30] sm:$0xff] (!%p190_p9)  ;;  %v318_v19 = vld [vmem:[%s902_s3 + $0x38] sm:$0xff] (!%p190_p9)  ;;  %s406_s14 = scalar_lea.sflag (!%p190_p9), [#allocation3], %s213_s26 }
  0x11   : > { %562 = vmatprep.subr.bf16.mxu0 (!%p190_p9), %v697_v3  ;;  %567 = vmatpush3.bf16.msra.mxu1 (!%p190_p9), %v566_v9  ;;  %v572_v17 = vpack.c.bf16 (!%p190_p9), %v316_v15, %v315_v14  ;;  %v575_v20 = vpack.c.bf16 (!%p190_p9), %v318_v19, %v317_v18  ;;  %v319_v21 = vld [vmem:[%s902_s3 + $0x40] sm:$0xff] (!%p190_p9)  ;;  %v320_v22 = vld [vmem:[%s902_s3 + $0x48] sm:$0xff] (!%p190_p9)  ;;  %v321_v24 = vld [vmem:[%s902_s3 + $0x50] sm:$0xff] (!%p190_p9) }
  0x12   : > { %568 = vmatprep.subr.bf16.mxu1 (!%p190_p9), %v697_v3  ;;  %v578_v23 = vpack.c.bf16 (!%p190_p9), %v320_v22, %v319_v21  ;;  %v322_v25 = vld [vmem:[%s902_s3 + $0x58] sm:$0xff] (!%p190_p9)  ;;  %v323_v27 = vld [vmem:[%s902_s3 + $0x60] sm:$0xff] (!%p190_p9)  ;;  %v324_v28 = vld [vmem:[%s902_s3 + $0x68] sm:$0xff] (!%p190_p9) }
  0x13   : > { %v581_v26 = vpack.c.bf16 (!%p190_p9), %v322_v25, %v321_v24  ;;  %v584_v29 = vpack.c.bf16 (!%p190_p9), %v324_v28, %v323_v27  ;;  %v325_v30 = vld [vmem:[%s902_s3 + $0x70] sm:$0xff] (!%p190_p9)  ;;  %v326_v31 = vld [vmem:[%s902_s3 + $0x78] sm:$0xff] (!%p190_p9)  ;;  %v484_v33 = vld [vmem:[%s901_s2] ss:$0 sm:$0xff] (!%p190_p9) }
  0x14   : > { %564 = vmatpush3.bf16.msra.mxu0 (!%p190_p9), %v563_v12  ;;  %v587_v32 = vpack.c.bf16 (!%p190_p9), %v326_v31, %v325_v30  ;;  %v486_v42 = vld [vmem:[%s903_s4] ss:$0 sm:$0xff] (!%p190_p9) }
  0x15   : > { %s217_s30 = scalar_select %p216_p10, %s752_s22, 1  ;;  %570 = vmatpush3.bf16.msra.mxu1 %v569_v13 }
  0x16   : > { %571 = vmatprep.subr.bf16.mxu1 %v697_v3  ;;  %s700_s22 = smov [#allocation2]  }
  0x17   : > { %s483_s6 = sshll.u32 %s217_s30, 3  ;;  %s482_s30 = sshll.u32 %s213_s26, 3 }
  0x18   : > { %s219_s13 = scalar_lea.vmem %s899_s0, %s483_s6  ;;  %s215_s9 = scalar_lea.vmem [#allocation2], %s482_s30 }
  0x19   : > { %v220_v16 = vld [vmem:[%s219_s13] sm:$0xff]  ;;  %573 = vmatpush3.bf16.msra.mxu1 %v572_v17  ;;  %s419_s10 = sshll.u32 %s215_s9, 4  ;;  %s856_s13 = scalar_lea.hbm %s904_s5, %s488_s8  ;;  %s858_s10 = int_to_ptr.vmem [resolvable:$true] %s419_s10 }
  0x1a   : > { %522 = vmatmul.mubr.msk.f32.vlgmr.msra.gmra.mrb[0].mxu0 %vm232_vm1, %v220_v16  ;;  %574 = vmatprep.subr.bf16.mxu1 %v697_v3  ;;  %s633_s15 = scalar_lea.vmem %s858_s10, 128  ;;  %s637_s16 = sshll.u32 %s700_s22, 4  ;;  %s638_s16 = int_to_ptr.vmem [resolvable:$false] %s637_s16 }
  0x1b   : > { %p634_p11 = scmp.ne.s32.totalorder %s858_s10, %s633_s15  ;;  %s639_s17 = scalar_lea.vmem %s638_s16, 256 }
  0x1c   : > { %p640_p0 = scmp.lt.s32.totalorder %s858_s10, %s638_s16  ;;  %p641_p1 = scmp.lt.s32.totalorder %s639_s17, %s633_s15 }
  0x1d   : > { %576 = vmatpush3.bf16.msra.mxu1 %v575_v20  ;;  %p635_p12 = pnand %p634_p11, %p769_p5 }
  0x1e   : > { %577 = vmatprep.subr.bf16.mxu1 %v697_v3  ;;  %p642_p2 = por %p641_p1, %p640_p0 }
  0x1f   : > { %p636_p13 = pneg %p635_p12 }
  0x21   : > { %579 = vmatpush3.bf16.msra.mxu1 %v578_v23  ;;  %p643_p3 = pnand %p642_p2, %p636_p13 }
  0x22   : > { %580 = vmatprep.subr.bf16.mxu1 %v697_v3 }
  0x25   : > { %582 = vmatpush3.bf16.msra.mxu1 %v581_v26 }
  0x26   : > { %583 = vmatprep.subr.bf16.mxu1 %v697_v3 }
  0x29   : > { %585 = vmatpush3.bf16.msra.mxu1 %v584_v29 }
  0x2a   : > { %586 = vmatprep.subr.bf16.mxu1 %v697_v3 }
  0x2d   : > { %588 = vmatpush3.bf16.msra.mxu1 %v587_v32 }
  0xed   : > { %v302_v34 = vpop.f32.mrb[0].mxu0 }
  0xee   : > { %v303_v35 = vadd.f32 %v484_v33, %v302_v34  ;;  %v523_v36 = vpop.f32.mrb[1].mxu0 }
  0xf0   : > { %v307_v37 = vmul.f32 0.70710677, %v303_v35  ;;  %v306_v39 = vmul.f32 0.5, %v303_v35 }
  0xf2   : > { %631 = verf.f32 %v307_v37 }
  0xfc   : > { %v632_v38 = vpop.eup %631 }
  0xfd   : > { %v309_v40 = vadd.f32 1.0, %v632_v38 }
  0xff   : > { %v310_v41 = vmul.f32 %v309_v40, %v306_v39 }
 0x101   : > { %557 = vmatmul.mubr.f32.vlgmr.msra.gmra.mrb[0].mxu1 %v310_v41 }
 0x1d4   : > { %v400_v43 = vpop.f32.mrb[0].mxu1 }
 0x1d5   : > { %v401_v44 = vadd.f32 %v486_v42, %v400_v43  ;;  %v558_v45 = vpop.f32.mrb[1].mxu1 }
 0x1d7   : > { %404 = vst.msk [vmem:[%s215_s9] sm:$0xff] %vm232_vm1, %v401_v44 }
 0x1d8   : > { %646 = shalt.err (!%p643_p3)
}
 0x1d9   : > { %s647_s23 = scalar_lea.hbm %s856_s13, 128  ;;  %s651_s30 = scalar_lea.hbm %s904_s5, 256 }
 0x1da   : > { %p648_p4 = scmp.ne.s32.totalorder %s856_s13, %s647_s23  ;;  %p652_p9 = scmp.lt.u32.totalorder %s856_s13, %s904_s5 }
 0x1db   : > { %p653_p10 = scmp.lt.u32.totalorder %s651_s30, %s647_s23  ;;  %p655_p12 = scmp.lt.u32.totalorder %s647_s23, %s856_s13 }
 0x1dc   : > { %p649_p7 = pnand %p648_p4, %p769_p5 }
 0x1dd   : > { %p654_p11 = por %p653_p10, %p652_p9 }
 0x1de   : > { %p650_p8 = pneg %p649_p7 }
 0x1df   : > { %p656_p13 = por %p655_p12, %p654_p11 }
 0x1e1   : > { %p657_p0 = pnand %p656_p13, %p650_p8 }
 0x1e3   : > { %660 = shalt.err (!%p657_p0)
}
 0x1e4   : > { %589 = dma.vmem_to_hbm [thread:$0]  (%p769_p5), %s858_s10, 128, %s856_s13, %s406_s14  }
 0x1e5 PF: > { %p595_p1 = scmp.ge.s32.totalorder %s695_s21, 2  ;;  %s431_s8 = sand.u32 1, %s683_s18  }
 0x1e6   : > { %s432_s9 = scalar_lea.sflag [#allocation3], %s431_s8 }
 0x1e7   : > { %p592_p2 = pnand %p595_p1, %p773_p6 }
 0x1e9   : > { %678 = dma.done.wait (!%p592_p2), %s432_s9, 128  }
 0x1ea   : > { %680 = vsyncadd (!%p592_p2), %s432_s9, 4294967168  ;;  %p15_p3 = scmp.ge.s32.totalorder %s756_s24, 4   ;;  %s907_s18 = smov %s687_s19 }
 0x1eb   : > { %s908_s19 = smov %s691_s20  ;;  %s909_s20 = smov %s767_s27 }
 0x1ec   : > { %s910_s21 = smov %s756_s24  ;;  %17 = sbr.rel (!%p15_p3) target bundleno = 3 (0x3), region = 75 }
 0x1f3   :  { %437 = vsyncpa [#allocation3], 1 }
 0x1f4   :  { %439 = vsyncpa [#allocation3 + $0x1], 1 }

</bundles_post_ra>
